<compile_context>
chip_gen: v7x
topology: tpu7x:2x2x1
jax: 0.10.0
libtpu: 0.0.40
codegen_flags: <defaults>
</compile_context>

<pallas_src>
import functools
import math

import jax
import jax.numpy as jnp
from jax import lax
from jax.experimental import pallas as pl
from jax.experimental.pallas import tpu as pltpu


def _layernorm_kernel(x_ref, gamma_ref, beta_ref, o_ref, *, eps: float):
    # x_ref: (tn, C, tHW).  Reduce over C (sublane axis); lanes (tHW) stay dense.
    # Single pass over x: var = E[x^2] - mean^2 in f32, clamped >= 0.
    x = x_ref[...].astype(jnp.float32)
    mean = jnp.mean(x, axis=1, keepdims=True)                  # (tn, 1, tHW)
    mean_sq = jnp.mean(x * x, axis=1, keepdims=True)           # (tn, 1, tHW)
    var = jnp.maximum(mean_sq - mean * mean, 0.0)              # biased var (matches .mean)
    inv = lax.rsqrt(var + eps)                                  # (tn, 1, tHW)
    g = gamma_ref[...].astype(jnp.float32)                      # (1, C, 1)
    b = beta_ref[...].astype(jnp.float32)                       # (1, C, 1)
    o_ref[...] = ((x - mean) * inv * g + b).astype(o_ref.dtype)


def _block_budget():
    """(per-block byte budget, scoped-VMEM limit) chosen per TPU generation."""
    try:
        kind = jax.devices()[0].device_kind.lower()
    except Exception:  # defensive (e.g. AOT compile off-TPU)
        kind = ""
    if "v5" in kind or "v6" in kind:
        # 128 MiB physical VMEM; v5e's *scoped* default is only 16 MiB, so we
        # raise the limit explicitly and can afford 8 MiB blocks.
        return 8 * 1024 * 1024, 96 * 1024 * 1024
    # v7x (64 MiB physical VMEM) and unknown generations: stay conservative.
    # Double-buffered in+out at 4 MiB blocks is ~16 MiB, well inside the limit.
    return 4 * 1024 * 1024, 48 * 1024 * 1024


def layer_norm(x: jax.Array, gamma: jax.Array, beta: jax.Array,
               eps: float = 1e-5) -> jax.Array:
    """LayerNorm over dim=1 of an [N, C, ...] tensor, as a Pallas TPU kernel."""
    orig_shape = x.shape
    n, c = orig_shape[0], orig_shape[1]
    hw = math.prod(orig_shape[2:]) if len(orig_shape) > 2 else 1

    max_block_bytes, vmem_limit_bytes = _block_budget()
    itemsize = jnp.dtype(x.dtype).itemsize

    # Pure reshapes (views) -- no transpose, no pad, no extra HBM traffic.
    x3 = x.reshape(n, c, hw)
    gamma3 = gamma.reshape(1, c, 1)
    beta3 = beta.reshape(1, c, 1)

    slab_bytes = c * hw * itemsize  # one batch element's (C, H*W) slab

    if slab_bytes <= max_block_bytes:
        # Small-spatial regime (late-stage 7x7/14x14 maps, or the demo below):
        # fold batch elements into the block so tiles stay large and per-step
        # overhead / masked lane-sparse stores don't dominate.
        tn = min(n, max(1, max_block_bytes // max(slab_bytes, 1)))
        grid = (pl.cdiv(n, tn),)
        x_spec = pl.BlockSpec((tn, c, hw), lambda i: (i, 0, 0))
        gb_spec = pl.BlockSpec((1, c, 1), lambda i: (0, 0, 0))
        out_spec = pl.BlockSpec((tn, c, hw), lambda i: (i, 0, 0))
        dim_sem = ("parallel",)
    else:
        # Large-spatial regime: one batch element per block, tile the lane axis
        # in multiples of 128 (ragged tail handled by pl.cdiv + masked stores).
        max_lanes = max(128, (max_block_bytes // (c * itemsize)) // 128 * 128)
        thw = hw if hw <= max_lanes else max_lanes
        n_hw = pl.cdiv(hw, thw)
        # NOTE: if plain ("parallel","parallel") turns out not to shard across
        # the two v7x TensorCores in xprof, switch the leading axis to
        # pltpu.CORE_PARALLEL; kept as "parallel" here for portability.
        if n_hw >= n:
            # Put the larger extent on the leading grid axis so megacore /
            # dual-TC sharding splits the bigger axis evenly.
            grid = (n_hw, n)
            x_spec = pl.BlockSpec((1, c, thw), lambda j, i: (i, 0, j))
            gb_spec = pl.BlockSpec((1, c, 1), lambda j, i: (0, 0, 0))
            out_spec = pl.BlockSpec((1, c, thw), lambda j, i: (i, 0, j))
        else:
            grid = (n, n_hw)
            x_spec = pl.BlockSpec((1, c, thw), lambda i, j: (i, 0, j))
            gb_spec = pl.BlockSpec((1, c, 1), lambda i, j: (0, 0, 0))
            out_spec = pl.BlockSpec((1, c, thw), lambda i, j: (i, 0, j))
        dim_sem = ("parallel", "parallel")

    out3 = pl.pallas_call(
        functools.partial(_layernorm_kernel, eps=eps),
        out_shape=jax.ShapeDtypeStruct((n, c, hw), x.dtype),
        grid_spec=pltpu.PrefetchScalarGridSpec(
            num_scalar_prefetch=0,
            grid=grid,
            in_specs=[x_spec, gb_spec, gb_spec],
            out_specs=out_spec,
        ),
        compiler_params=pltpu.CompilerParams(
            dimension_semantics=dim_sem,
            vmem_limit_bytes=vmem_limit_bytes),
    )(x3, gamma3, beta3)

    return out3.reshape(orig_shape)


def residual(module_fn, *args, **kwargs):
    # Residual.forward(*args, **kwargs) == self.module(*args, **kwargs).
    # TODO(synk): Residual adds no computation of its own; only the wrapped
    # module (the LayerNorm kernel above) is implemented in Pallas.
    return module_fn(*args, **kwargs)


def _reference(x, gamma, beta, eps=1e-5):
    mean = jnp.mean(x, axis=1, keepdims=True)
    var = jnp.mean((x - mean) ** 2, axis=1, keepdims=True)
    y = (x - mean) * lax.rsqrt(var + eps)
    shape = (1, -1) + (1,) * (x.ndim - 2)
    return y * gamma.reshape(shape) + beta.reshape(shape)


if __name__ == "__main__":
    key = jax.random.PRNGKey(0)
    N, C, H, W = 2, 4, 16, 16
    x = jax.random.normal(key, (N, C, H, W), dtype=jnp.float32)

    # Parameters as in the wrapped module's __init__ (deterministic).
    gamma = jnp.ones((C,), dtype=jnp.float32)
    beta = jnp.zeros((C,), dtype=jnp.float32)

    out = residual(layer_norm, x, gamma, beta, eps=1e-5)
    out = jax.block_until_ready(out)

    ref = _reference(x, gamma, beta, eps=1e-5)
    assert out.shape == x.shape and out.dtype == x.dtype
    # Single-pass E[x^2]-mean^2 variance differs from the two-pass reference
    # only by f32 rounding; 1e-4 comfortably covers that.
    assert jnp.allclose(out, ref, atol=1e-4, rtol=1e-4), "mismatch vs reference"
    print("KERNEL_OK")
</pallas_src>

<mosaic_0001>
module attributes {stable_mosaic.version = 11 : i64} {
  func.func @_layernorm_kernel(%arg0: i32, %arg1: memref<2x4x256xf32, #tpu.memory_space<vmem>>, %arg2: memref<1x4x1xf32, #tpu.memory_space<vmem>>, %arg3: memref<1x4x1xf32, #tpu.memory_space<vmem>>, %arg4: memref<2x4x256xf32, #tpu.memory_space<vmem>>) attributes {dimension_semantics = [#tpu.dimension_semantics<parallel>], iteration_bounds = array<i64: 1>, scalar_prefetch = 0 : i64, scratch_operands = 0 : i64, tpu.core_type = #tpu.core_type<tc>, window_params = [{transform_indices = @transform_0, window_bounds = array<i64: 2, 4, 256>}, {pipeline_mode = #tpu.pipeline_mode<synchronous>, transform_indices = @transform_1, window_bounds = array<i64: 1, 4, 1>}, {pipeline_mode = #tpu.pipeline_mode<synchronous>, transform_indices = @transform_2, window_bounds = array<i64: 1, 4, 1>}, {transform_indices = @transform_3, window_bounds = array<i64: 2, 4, 256>}]} {
    %c0 = arith.constant 0 : index
    %c0_0 = arith.constant 0 : index
    %c0_1 = arith.constant 0 : index
    %0 = vector.load %arg1[%c0, %c0_0, %c0_1] : memref<2x4x256xf32, #tpu.memory_space<vmem>>, vector<2x4x256xf32>
    %cst = arith.constant dense<0.000000e+00> : vector<2x256xf32>
    %1 = vector.multi_reduction <add>, %0, %cst [1] : vector<2x4x256xf32> to vector<2x256xf32>
    %2 = vector.shape_cast %1 : vector<2x256xf32> to vector<2x1x256xf32>
    %cst_2 = arith.constant 4.000000e+00 : f32
    %3 = vector.broadcast %cst_2 : f32 to vector<2x1x256xf32>
    %4 = arith.divf %2, %3 : vector<2x1x256xf32>
    %5 = arith.mulf %0, %0 : vector<2x4x256xf32>
    %cst_3 = arith.constant dense<0.000000e+00> : vector<2x256xf32>
    %6 = vector.multi_reduction <add>, %5, %cst_3 [1] : vector<2x4x256xf32> to vector<2x256xf32>
    %7 = vector.shape_cast %6 : vector<2x256xf32> to vector<2x1x256xf32>
    %cst_4 = arith.constant 4.000000e+00 : f32
    %8 = vector.broadcast %cst_4 : f32 to vector<2x1x256xf32>
    %9 = arith.divf %7, %8 : vector<2x1x256xf32>
    %10 = arith.mulf %4, %4 : vector<2x1x256xf32>
    %11 = arith.subf %9, %10 : vector<2x1x256xf32>
    %cst_5 = arith.constant 0.000000e+00 : f32
    %12 = vector.broadcast %cst_5 : f32 to vector<2x1x256xf32>
    %13 = arith.maximumf %11, %12 : vector<2x1x256xf32>
    %cst_6 = arith.constant 9.99999974E-6 : f32
    %14 = vector.broadcast %cst_6 : f32 to vector<2x1x256xf32>
    %15 = arith.addf %13, %14 : vector<2x1x256xf32>
    %16 = math.rsqrt %15 : vector<2x1x256xf32>
    %c0_7 = arith.constant 0 : index
    %c0_8 = arith.constant 0 : index
    %c0_9 = arith.constant 0 : index
    %17 = vector.load %arg2[%c0_7, %c0_8, %c0_9] : memref<1x4x1xf32, #tpu.memory_space<vmem>>, vector<1x4x1xf32>
    %c0_10 = arith.constant 0 : index
    %c0_11 = arith.constant 0 : index
    %c0_12 = arith.constant 0 : index
    %18 = vector.load %arg3[%c0_10, %c0_11, %c0_12] : memref<1x4x1xf32, #tpu.memory_space<vmem>>, vector<1x4x1xf32>
    %19 = vector.broadcast %4 : vector<2x1x256xf32> to vector<2x4x256xf32>
    %20 = arith.subf %0, %19 : vector<2x4x256xf32>
    %21 = vector.broadcast %16 : vector<2x1x256xf32> to vector<2x4x256xf32>
    %22 = arith.mulf %20, %21 : vector<2x4x256xf32>
    %23 = vector.broadcast %17 : vector<1x4x1xf32> to vector<2x4x256xf32>
    %24 = arith.mulf %22, %23 : vector<2x4x256xf32>
    %25 = vector.broadcast %18 : vector<1x4x1xf32> to vector<2x4x256xf32>
    %26 = arith.addf %24, %25 : vector<2x4x256xf32>
    %c0_13 = arith.constant 0 : index
    %c0_14 = arith.constant 0 : index
    %c0_15 = arith.constant 0 : index
    %27 = vector.load %arg4[%c0_13, %c0_14, %c0_15] : memref<2x4x256xf32, #tpu.memory_space<vmem>>, vector<2x4x256xf32>
    tpu.vector_store %arg4[%c0_13, %c0_14, %c0_15], %26 {strides = array<i32>} : memref<2x4x256xf32, #tpu.memory_space<vmem>>, vector<2x4x256xf32>,
    return
  }
  func.func @transform_0(%arg0: i32) -> (i32, i32, i32) {
    %c0_i32 = arith.constant 0 : i32
    %c0_i32_0 = arith.constant 0 : i32
    %c0_i32_1 = arith.constant 0 : i32
    return %arg0, %c0_i32, %c0_i32_0 : i32, i32, i32
  }
  func.func @transform_1(%arg0: i32) -> (i32, i32, i32) {
    %c0_i32 = arith.constant 0 : i32
    %c0_i32_0 = arith.constant 0 : i32
    %c0_i32_1 = arith.constant 0 : i32
    %c0_i32_2 = arith.constant 0 : i32
    return %c0_i32, %c0_i32_0, %c0_i32_1 : i32, i32, i32
  }
  func.func @transform_2(%arg0: i32) -> (i32, i32, i32) {
    %c0_i32 = arith.constant 0 : i32
    %c0_i32_0 = arith.constant 0 : i32
    %c0_i32_1 = arith.constant 0 : i32
    %c0_i32_2 = arith.constant 0 : i32
    return %c0_i32, %c0_i32_0, %c0_i32_1 : i32, i32, i32
  }
  func.func @transform_3(%arg0: i32) -> (i32, i32, i32) {
    %c0_i32 = arith.constant 0 : i32
    %c0_i32_0 = arith.constant 0 : i32
    %c0_i32_1 = arith.constant 0 : i32
    return %arg0, %c0_i32, %c0_i32_0 : i32, i32, i32
  }
}

</mosaic_0001>

<bundles_post_ra>
// kernel: tpu_custom_call.1
= control target key start
LH: loop header
LB: loop body
LE: loop exit
PB: predicated region body
PF: predicated region fallthrough
CT: control target
= control target key end

     0   :  { %8 = vsyncpa [#allocation3], 0  ;;  %s351_s0 = inlined_call_operand.hbm [shape: f32[2,4,256], index: 0, kind: input, shape index: {}]   ;;  %s352_s1 = inlined_call_operand.vmem [shape: f32[1,4,1], index: 1, kind: input, shape index: {}]   ;;  %s353_s2 = inlined_call_operand.vmem [shape: f32[1,4,1], index: 2, kind: input, shape index: {}]   ;;  %s354_s3 = inlined_call_operand.hbm [shape: f32[2,4,256], index: 3, kind: output, shape index: {}]  }
   0x1   :  { %9 = vsyncpa [#allocation4], 0  ;;  %s265_s12 = smov [#allocation2]   ;;  %s217_s16 = scalar_lea.hbm %s351_s0, 256 }
   0x2   :  { %s15_s13 = sshll.u32 %s265_s12, 4  ;;  %p218_p0 = scmp.ne.s32.totalorder %s351_s0, %s217_s16  ;;  %s16_s13 = int_to_ptr.vmem [resolvable:$true] %s15_s13 }
   0x3   :  { %p221_p1 = scmp.lt.u32.totalorder %s217_s16, %s351_s0 }
   0x5   :  { %p223_p2 = pnand %p221_p1, %p218_p0 }
   0x7   :  { %226 = shalt.err (!%p223_p2)
}
   0x8   :  { %s227_s21 = scalar_lea.vmem %s16_s13, 256  ;;  %p232_p4 = scmp.lt.s32.totalorder %s16_s13, %s16_s13 }
   0x9   :  { %p228_p3 = scmp.ne.s32.totalorder %s16_s13, %s227_s21  ;;  %p233_p5 = scmp.lt.s32.totalorder %s227_s21, %s227_s21 }
   0xb   :  { %p234_p6 = por %p233_p5, %p232_p4 }
   0xd   :  { %p235_p7 = pnand %p234_p6, %p228_p3 }
   0xf   :  { %238 = shalt.err (!%p235_p7)
}
  0x10   :  { %s266_s22 = smov 128   ;;  %s267_s23 = smov 8  }
  0x11   :  { %21 = dma.hbm_to_vmem [thread:$0]  %s351_s0, 256, %s16_s13, [#allocation3], %s266_s22, %s266_s22, %s267_s23  }
  0x12   :  { %261 = dma.done.wait [#allocation3], 256  }
  0x13   :  { %262 = vsyncadd [#allocation3], 4294967040  ;;  %v268_v0 = vmov 0   ;;  %v131_v1 = vld [vmem:[%s352_s1] sm:$0xf]  ;;  %v314_v4 = vld [vmem:[#allocation2 + $0x8] sm:$0xff] }
  0x14   :  { %206 = vset.pattern.permute.xlu0 %v268_v0  ;;  %v132_v2 = vld [vmem:[%s353_s2] sm:$0xf]  ;;  %vm37_vm0 = vcmask 1043456   ;;  %v34_v7 = vcombine.high %v314_v4, %v314_v4  ;;  %v72_v8 = vmul.f32 %v314_v4, %v314_v4  ;;  %s270_s0 = smov [#allocation5]  }
  0x15   :  { %155 = vperm.xlu0 %206, %v131_v1   ;;  %v312_v3 = vld [vmem:[#allocation2] sm:$0xff]  ;;  %v52_v12 = vsel %vm37_vm0, %v314_v4, 0.0  ;;  %s188_s1 = sshll.u32 %s270_s0, 4  ;;  %s189_s1 = int_to_ptr.vmem [resolvable:$true] %s188_s1 }
  0x16   :  { %v33_v5 = vcombine.high %v312_v3, %v312_v3  ;;  %v71_v6 = vmul.f32 %v312_v3, %v312_v3  ;;  %v38_v9 = vsel %vm37_vm0, %v312_v3, 0.0  ;;  %v59_v14 = vsel %vm37_vm0, %v34_v7, 0.0  ;;  %s239_s2 = scalar_lea.vmem %s189_s1, 256  ;;  %p244_p9 = scmp.lt.s32.totalorder %s189_s1, %s189_s1 }
  0x17   :  { %v39_v13 = vrot.slane %v38_v9, 4  ;;  %v76_v15 = vcombine.high %v72_v8, %v72_v8  ;;  %v53_v18 = vrot.slane %v52_v12, 4  ;;  %v60_v20 = vrot.slane %v59_v14, 4  ;;  %p240_p8 = scmp.ne.s32.totalorder %s189_s1, %s239_s2  ;;  %p245_p10 = scmp.lt.s32.totalorder %s239_s2, %s239_s2 }
  0x18   :  { %v45_v10 = vsel %vm37_vm0, %v33_v5, 0.0  ;;  %v75_v11 = vcombine.high %v71_v6, %v71_v6  ;;  %v79_v17 = vsel %vm37_vm0, %v71_v6, 0.0  ;;  %v93_v21 = vsel %vm37_vm0, %v72_v8, 0.0 }
  0x19   :  { %169 = vperm.xlu0 %206, %v132_v2   ;;  %v46_v16 = vrot.slane %v45_v10, 4  ;;  %v40_v22 = vadd.f32 %v39_v13, %v38_v9  ;;  %v80_v23 = vrot.slane %v79_v17, 4  ;;  %v100_v24 = vsel %vm37_vm0, %v76_v15, 0.0  ;;  %p246_p11 = por %p245_p10, %p244_p9 }
  0x1a   :  { %v86_v19 = vsel %vm37_vm0, %v75_v11, 0.0  ;;  %v54_v27 = vadd.f32 %v53_v18, %v52_v12  ;;  %v94_v28 = vrot.slane %v93_v21, 4  ;;  %v61_v29 = vadd.f32 %v60_v20, %v59_v14 }
  0x1b   :  { %v47_v25 = vadd.f32 %v46_v16, %v45_v10  ;;  %v87_v26 = vrot.slane %v86_v19, 4  ;;  %v101_v30 = vrot.slane %v100_v24, 4  ;;  %v41_v31 = vrot.slane %v40_v22, 2  ;;  %p247_p12 = pnand %p246_p11, %p240_p8 }
  0x1c   :  { %v81_v32 = vadd.f32 %v80_v23, %v79_v17  ;;  %v55_v35 = vrot.slane %v54_v27, 2  ;;  %v95_v36 = vadd.f32 %v94_v28, %v93_v21  ;;  %v62_v37 = vrot.slane %v61_v29, 2 }
  0x1d   :  { %v48_v33 = vrot.slane %v47_v25, 2  ;;  %v88_v34 = vadd.f32 %v87_v26, %v86_v19  ;;  %v102_v38 = vadd.f32 %v101_v30, %v100_v24  ;;  %v42_v39 = vadd.f32 %v41_v31, %v40_v22 }
  0x1e   :  { %v82_v40 = vrot.slane %v81_v32, 2  ;;  %v56_v43 = vadd.f32 %v55_v35, %v54_v27  ;;  %v96_v44 = vrot.slane %v95_v36, 2  ;;  %v63_v45 = vadd.f32 %v62_v37, %v61_v29 }
  0x1f   :  { %v49_v41 = vadd.f32 %v48_v33, %v47_v25  ;;  %v89_v42 = vrot.slane %v88_v34, 2  ;;  %v103_v46 = vrot.slane %v102_v38, 2  ;;  %v43_v47 = vrot.slane %v42_v39, 1 }
  0x20   :  { %v83_v48 = vadd.f32 %v82_v40, %v81_v32  ;;  %v57_v51 = vrot.slane %v56_v43, 1  ;;  %v97_v52 = vadd.f32 %v96_v44, %v95_v36  ;;  %v64_v53 = vrot.slane %v63_v45, 1 }
  0x21   :  { %v50_v49 = vrot.slane %v49_v41, 1  ;;  %v90_v50 = vadd.f32 %v89_v42, %v88_v34  ;;  %v104_v54 = vadd.f32 %v103_v46, %v102_v38  ;;  %v44_v55 = vadd.f32 %v43_v47, %v42_v39 }
  0x22   :  { %v84_v56 = vrot.slane %v83_v48, 1  ;;  %v58_v59 = vadd.f32 %v57_v51, %v56_v43  ;;  %v98_v60 = vrot.slane %v97_v52, 1  ;;  %v65_v61 = vadd.f32 %v64_v53, %v63_v45 }
  0x23   :  { %v51_v57 = vadd.f32 %v50_v49, %v49_v41  ;;  %v91_v58 = vrot.slane %v90_v50, 1  ;;  %v105_v62 = vrot.slane %v104_v54, 1  ;;  %v67_v63 = vmul.f32 0.25, %v44_v55 }
  0x24   :  { %v85_v0 = vadd.f32 %v84_v56, %v83_v48  ;;  %v69_v5 = vmul.f32 0.25, %v58_v59  ;;  %v99_v6 = vadd.f32 %v98_v60, %v97_v52  ;;  %v70_v7 = vmul.f32 0.25, %v65_v61 }
  0x25   :  { %v68_v1 = vmul.f32 0.25, %v51_v57  ;;  %v92_v2 = vadd.f32 %v91_v58, %v90_v50  ;;  %v106_v8 = vadd.f32 %v105_v62, %v104_v54  ;;  %v111_v10 = vmul.f32 %v67_v63, %v67_v63 }
  0x26   :  { %v107_v9 = vmul.f32 0.25, %v85_v0  ;;  %v109_v13 = vmul.f32 0.25, %v99_v6  ;;  %v113_v14 = vmul.f32 %v69_v5, %v69_v5  ;;  %v114_v16 = vmul.f32 %v70_v7, %v70_v7 }
  0x27   :  { %v108_v11 = vmul.f32 0.25, %v92_v2  ;;  %v112_v12 = vmul.f32 %v68_v1, %v68_v1  ;;  %v110_v15 = vmul.f32 0.25, %v106_v8  ;;  %v269_v29 = vmov 839922192  }
  0x28   :  { %v115_v17 = vsub.f32 %v107_v9, %v111_v10  ;;  %v117_v19 = vsub.f32 %v109_v13, %v113_v14  ;;  %v158_v30 = vunpack.c.l.s4 %v269_v29  ;;  %v160_v31 = vlaneseq }
  0x29   :  { %v116_v18 = vsub.f32 %v108_v11, %v112_v12  ;;  %v118_v20 = vsub.f32 %v110_v15, %v114_v16  ;;  %v137_v37 = vcombine.low %v67_v63, %v68_v1  ;;  %v138_v38 = vcombine.low %v69_v5, %v70_v7 }
  0x2a   :  { %v119_v21 = vmax.f32 %v115_v17, 0.0  ;;  %v121_v23 = vmax.f32 %v117_v19, 0.0  ;;  %v159_v34 = vunpack.c.0.s8 %v158_v30  ;;  %v161_v35 = vshrl.u32 %v160_v31, 7 }
  0x2b   :  { %v120_v22 = vmax.f32 %v116_v18, 0.0  ;;  %v122_v24 = vmax.f32 %v118_v20, 0.0  ;;  %v141_v41 = vsub.f32 %v312_v3, %v137_v37  ;;  %v142_v42 = vsub.f32 %v314_v4, %v138_v38 }
  0x2c   :  { %v123_v25 = vadd.f32 1e-05, %v119_v21  ;;  %v125_v27 = vadd.f32 1e-05, %v121_v23  ;;  %v162_v40 = vsub.s32 %v159_v34, %v161_v35 }
  0x2d   :  { %v124_v26 = vadd.f32 1e-05, %v120_v22  ;;  %v126_v28 = vadd.f32 1e-05, %v122_v24 }
  0x2e   :  { %209 = vrsqrt.f32 %v123_v25 }
  0x2f   :  { %211 = vrsqrt.f32 %v124_v26 }
  0x30   :  { %213 = vrsqrt.f32 %v125_v27 }
  0x31   :  { %215 = vrsqrt.f32 %v126_v28 }
  0x38   :  { %v210_v32 = vpop.eup %209 }
  0x39   :  { %v212_v33 = vpop.eup %211 }
  0x3a   :  { %v214_v36 = vpop.eup %213  ;;  %v147_v43 = vcombine.low %v210_v32, %v212_v33 }
  0x3b   :  { %v216_v39 = vpop.eup %215 }
  0x3c   :  { %v148_v44 = vcombine.low %v214_v36, %v216_v39  ;;  %v151_v46 = vmul.f32 %v147_v43, %v141_v41 }
  0x3e   :  { %v152_v47 = vmul.f32 %v148_v44, %v142_v42 }
  0x94   :  { %v156_v45 = vpop.permute.xlu0 %155 }
  0x95   :  { %v163_v48 = vrot.slane %v156_v45, %v162_v40 }
  0x97   :  { %v165_v50 = vmul.f32 %v163_v48, %v151_v46  ;;  %v166_v51 = vmul.f32 %v163_v48, %v152_v47 }
  0x98   :  { %v170_v49 = vpop.permute.xlu0 %169 }
  0x99   :  { %v177_v52 = vrot.slane %v170_v49, %v162_v40 }
  0x9b   :  { %v179_v53 = vadd.f32 %v177_v52, %v165_v50  ;;  %v180_v54 = vadd.f32 %v177_v52, %v166_v51 }
  0x9d   :  { %181 = vst [vmem:[#allocation5] sm:$0xff] %v179_v53  ;;  %182 = vst [vmem:[#allocation5 + $0x8] sm:$0xff] %v180_v54 }
  0x9e   :  { %250 = shalt.err (!%p247_p12)
}
  0x9f   :  { %s251_s5 = scalar_lea.hbm %s354_s3, 256 }
  0xa0   :  { %p252_p13 = scmp.ne.s32.totalorder %s354_s3, %s251_s5  ;;  %p255_p0 = scmp.lt.u32.totalorder %s251_s5, %s354_s3 }
  0xa2   :  { %p257_p1 = pnand %p255_p0, %p252_p13 }
  0xa4   :  { %260 = shalt.err (!%p257_p1)
}
  0xa5   :  { %194 = dma.vmem_to_hbm [thread:$0]  %s189_s1, 256, %s354_s3, [#allocation4], %s266_s22, %s266_s22, %s267_s23  }
  0xa6   :  { %263 = dma.done.wait [#allocation4], 256  }
  0xa7   :  { %264 = vsyncadd [#allocation4], 4294967040 }
  0xa8   :  { %198 = vsyncpa [#allocation3], 1 }
  0xa9   :  { %199 = vsyncpa [#allocation4], 1 }

</bundles_post_ra>
